<compile_context>
chip_gen: v7x
topology: tpu7x:2x2x1
jax: 0.10.0
libtpu: 0.0.40
codegen_flags: <defaults>
</compile_context>

<pallas_src>
import jax
import jax.numpy as jnp
import numpy as np
from jax.experimental import pallas as pl
from jax.experimental.pallas import tpu as pltpu


def _round_up(x, m):
    return ((x + m - 1) // m) * m


def _batch_tiling(B):
    """Return (padded_B, batch_tile).

    * small B       -> one full-(padded)-batch tile (block == full dim).
    * 256 < B <= 1K -> 256-row tiles (>= 2 "parallel" steps for v7x megacore).
    * larger B      -> 512-row tiles (85%+ of HBM roofline territory).
    """
    if B <= 256:
        tb = max(8, _round_up(B, 8))
        return tb, tb
    tb = 256 if B <= 1024 else 512
    return _round_up(B, tb), tb


def _pick_k_tile(NH):
    """Contraction (N*H) tile: 256/512-aligned feeds a full v6e/v7x MXU pass."""
    for tk in (512, 256, 128):
        if NH % tk == 0:
            return tk
    return NH  # full-dim fallback (legal: block == full array dim)


# --------------------------------------------------------------------------
# Kernels
# --------------------------------------------------------------------------
def _make_reduce_kernel(scale):
    """sum_n MLP_n(x)  ==  ReLU(x @ W1_cat + b1_cat) @ reshape(W2) + sum_n b2.

    Grid = (batch tiles, K tiles over N*H).  f32 accumulator in VMEM scratch;
    both matmuls hit the MXU with bf16 operands and f32 accumulation.
    """
    def kernel(x_ref, w1_ref, b1_ref, w2_ref, b2_ref, o_ref, acc_ref):
        k = pl.program_id(1)

        @pl.when(k == 0)
        def _():
            acc_ref[...] = jnp.zeros_like(acc_ref)

        h = jnp.dot(x_ref[...], w1_ref[...], preferred_element_type=jnp.float32)
        h = jnp.maximum(h + b1_ref[...], 0.0)                 # (TB, TK), b1 (1, TK)
        acc_ref[...] += jnp.dot(h.astype(w2_ref.dtype), w2_ref[...],
                                preferred_element_type=jnp.float32)

        @pl.when(k == pl.num_programs(1) - 1)
        def _():
            y = acc_ref[...] + b2_ref[...]                    # b2 is (1, D_out)
            if scale != 1.0:                                  # 'mean' path only
                y = y * scale
            o_ref[...] = y.astype(o_ref.dtype)
    return kernel


def _individuals_kernel(x_ref, w1_ref, b1_ref, w2_ref, b2_ref, o_ref):
    """One ensemble member, one batch tile: out[n, i-tile] = MLP_n(x_tile)."""
    h = jnp.dot(x_ref[...], w1_ref[0], preferred_element_type=jnp.float32)
    h = jnp.maximum(h + b1_ref[0], 0.0)                       # (TB, H)
    y = jnp.dot(h.astype(w2_ref.dtype), w2_ref[0],
                preferred_element_type=jnp.float32)
    o_ref[0] = y + b2_ref[0]                                  # (TB, D_out)


# --------------------------------------------------------------------------
# Parameter packing (run ONCE per parameter set, not per forward call)
# --------------------------------------------------------------------------
def pack_ensemble_params(params, compute_dtype=jnp.bfloat16):
    """Pre-compute all weight layouts / casts used by the forward kernels."""
    w1, b1, w2, b2 = params
    N, D_in, H = w1.shape
    D_out = w2.shape[-1]
    NH = N * H
    return {
        "dims": (N, D_in, H, D_out),
        "compute_dtype": compute_dtype,
        # --- fused reduce (sum/mean) path ---
        "w1_cat": jnp.transpose(w1, (1, 0, 2)).reshape(D_in, NH).astype(compute_dtype),
        "b1_cat": b1.reshape(1, NH).astype(jnp.float32),
        "w2_sum": w2.reshape(NH, D_out).astype(compute_dtype),
        "b2_sum": jnp.sum(b2, axis=0).reshape(1, D_out).astype(jnp.float32),
        # --- per-member individuals path ---
        "w1_mem": w1.astype(compute_dtype),                 # (N, D_in, H)
        "b1_mem": b1.reshape(N, 1, H).astype(jnp.float32),  # (N, 1, H)
        "w2_mem": w2.astype(compute_dtype),                 # (N, H, D_out)
        "b2_mem": b2.reshape(N, 1, D_out).astype(jnp.float32),
    }


# --------------------------------------------------------------------------
# Forward
# --------------------------------------------------------------------------
def ensemble_nets_forward(x, packed, *, sums=True, reduce_method="sum",
                          override_return_individuals=False):
    """Forward pass matching EnsembleNets(split_input=False).

    Returns (B, D_out) when reducing, else (N, B, D_out).
    """
    if reduce_method not in ("sum", "mean"):
        print("Ensemble Nets ERROR: Unsupported reduce method %s" % reduce_method)
        raise ValueError("Unsupported reduce method: %s" % reduce_method)

    N, D_in, H, D_out = packed["dims"]
    NH = N * H
    cdt = packed["compute_dtype"]
    B = x.shape[0]

    bp, tb = _batch_tiling(B)
    xc = x.astype(cdt)
    if bp != B:                       # cdiv-style gridding: pad batch once
        xc = jnp.pad(xc, ((0, bp - B), (0, 0)))
    nb = bp // tb

    reduce_path = sums and not override_return_individuals

    if reduce_path:
        tk = _pick_k_tile(NH)
        nk = NH // tk
        scale = (1.0 / N) if reduce_method == "mean" else 1.0
        out = pl.pallas_call(
            _make_reduce_kernel(scale),
            out_shape=jax.ShapeDtypeStruct((bp, D_out), jnp.float32),
            grid_spec=pltpu.PrefetchScalarGridSpec(
                num_scalar_prefetch=0,
                grid=(nb, nk),
                in_specs=[
                    pl.BlockSpec((tb, D_in), lambda i, k: (i, 0)),   # x tile (re-used along k)
                    pl.BlockSpec((D_in, tk), lambda i, k: (0, k)),   # W1 columns for this k tile
                    pl.BlockSpec((1, tk),    lambda i, k: (0, k)),   # b1 slice
                    pl.BlockSpec((tk, D_out), lambda i, k: (k, 0)),  # W2 rows for this k tile
                    pl.BlockSpec((1, D_out), lambda i, k: (0, 0)),   # summed b2 (tiny, invariant)
                ],
                out_specs=pl.BlockSpec((tb, D_out), lambda i, k: (i, 0)),
                scratch_shapes=[pltpu.VMEM((tb, D_out), jnp.float32)],
            ),
            compiler_params=pltpu.CompilerParams(
                dimension_semantics=("parallel", "arbitrary")),
        )(xc, packed["w1_cat"], packed["b1_cat"], packed["w2_sum"], packed["b2_sum"])
        return out[:B] if bp != B else out

    # Individuals path: grid over (member, batch tile); writes (N, B, D_out)
    # directly (no wrapper transpose / slice, no block-diagonal zero FLOPs).
    out = pl.pallas_call(
        _individuals_kernel,
        out_shape=jax.ShapeDtypeStruct((N, bp, D_out), jnp.float32),
        grid_spec=pltpu.PrefetchScalarGridSpec(
            num_scalar_prefetch=0,
            grid=(N, nb),
            in_specs=[
                pl.BlockSpec((tb, D_in),     lambda n, i: (i, 0)),   # x tile
                pl.BlockSpec((1, D_in, H),   lambda n, i: (n, 0, 0)),  # W1_n
                pl.BlockSpec((1, 1, H),      lambda n, i: (n, 0, 0)),  # b1_n
                pl.BlockSpec((1, H, D_out),  lambda n, i: (n, 0, 0)),  # W2_n
                pl.BlockSpec((1, 1, D_out),  lambda n, i: (n, 0, 0)),  # b2_n
            ],
            out_specs=pl.BlockSpec((1, tb, D_out), lambda n, i: (n, i, 0)),
        ),
        compiler_params=pltpu.CompilerParams(
            dimension_semantics=("parallel", "parallel")),
    )(xc, packed["w1_mem"], packed["b1_mem"], packed["w2_mem"], packed["b2_mem"])
    return out[:, :B] if bp != B else out


# --------------------------------------------------------------------------
# Reference / init / demo
# --------------------------------------------------------------------------
def _reference_forward(x, params, sums=True, reduce_method="sum",
                       compute_dtype=jnp.float32):
    """Plain-JAX reference mirroring the PyTorch module semantics (and the
    kernel's operand-precision casts, so comparisons are apples-to-apples)."""
    w1, b1, w2, b2 = params
    f32 = jnp.float32
    xc = x.astype(compute_dtype).astype(f32)
    w1c = w1.astype(compute_dtype).astype(f32)
    w2c = w2.astype(compute_dtype).astype(f32)
    h = jnp.maximum(jnp.einsum("bd,ndh->nbh", xc, w1c) + b1[:, None, :].astype(f32), 0.0)
    h = h.astype(compute_dtype).astype(f32)
    y = jnp.einsum("nbh,nho->nbo", h, w2c) + b2[:, None, :].astype(f32)
    if sums:
        return jnp.sum(y, axis=0) if reduce_method == "sum" else jnp.mean(y, axis=0)
    return y


def _init_params(key, n_nets, d_in, hidden, d_out):
    """Deterministic PyTorch-Linear-style init (uniform +-1/sqrt(fan_in))."""
    ks = jax.random.split(key, 4)
    lim1 = 1.0 / np.sqrt(d_in)
    lim2 = 1.0 / np.sqrt(hidden)
    w1 = jax.random.uniform(ks[0], (n_nets, d_in, hidden), jnp.float32, -lim1, lim1)
    b1 = jax.random.uniform(ks[1], (n_nets, hidden), jnp.float32, -lim1, lim1)
    w2 = jax.random.uniform(ks[2], (n_nets, hidden, d_out), jnp.float32, -lim2, lim2)
    b2 = jax.random.uniform(ks[3], (n_nets, d_out), jnp.float32, -lim2, lim2)
    return w1, b1, w2, b2


if __name__ == "__main__":
    key = jax.random.PRNGKey(0)
    k_x, k_p = jax.random.split(key)

    N_NETS, B, D_IN, HIDDEN, D_OUT = 4, 8, 32, 32, 8
    CDT = jnp.bfloat16

    x = jax.random.normal(k_x, (B, D_IN), jnp.float32)
    params = _init_params(k_p, N_NETS, D_IN, HIDDEN, D_OUT)
    packed = pack_ensemble_params(params, compute_dtype=CDT)   # once, cached

    # Default module behavior: sums=True, reduce='sum'
    out_sum = ensemble_nets_forward(x, packed, sums=True, reduce_method="sum")
    out_sum = jax.block_until_ready(out_sum)

    # Mean reduction
    out_mean = ensemble_nets_forward(x, packed, sums=True, reduce_method="mean")
    out_mean = jax.block_until_ready(out_mean)

    # Individuals path (override_return_individuals=True) -> (N, B, D_out)
    out_stack = ensemble_nets_forward(x, packed, override_return_individuals=True)
    out_stack = jax.block_until_ready(out_stack)

    # Validate against the plain-JAX reference (same bf16 operand rounding).
    ref_sum = _reference_forward(x, params, True, "sum", CDT)
    ref_mean = _reference_forward(x, params, True, "mean", CDT)
    ref_stack = _reference_forward(x, params, False, "sum", CDT)
    np.testing.assert_allclose(np.asarray(out_sum), np.asarray(ref_sum),
                               rtol=1e-2, atol=1e-2)
    np.testing.assert_allclose(np.asarray(out_mean), np.asarray(ref_mean),
                               rtol=1e-2, atol=1e-2)
    np.testing.assert_allclose(np.asarray(out_stack), np.asarray(ref_stack),
                               rtol=1e-2, atol=1e-2)

    print("KERNEL_OK")
</pallas_src>

<mosaic_0001>
module attributes {stable_mosaic.version = 11 : i64} {
  func.func @kernel(%arg0: i32, %arg1: i32, %arg2: memref<8x32xbf16, #tpu.memory_space<vmem>>, %arg3: memref<32x128xbf16, #tpu.memory_space<vmem>>, %arg4: memref<1x128xf32, #tpu.memory_space<vmem>>, %arg5: memref<128x8xbf16, #tpu.memory_space<vmem>>, %arg6: memref<1x8xf32, #tpu.memory_space<vmem>>, %arg7: memref<8x8xf32, #tpu.memory_space<vmem>>, %arg8: memref<8x8xf32, #tpu.memory_space<vmem>>) attributes {dimension_semantics = [#tpu.dimension_semantics<parallel>, #tpu.dimension_semantics<arbitrary>], iteration_bounds = array<i64: 1, 1>, scalar_prefetch = 0 : i64, scratch_operands = 1 : i64, tpu.core_type = #tpu.core_type<tc>, window_params = [{transform_indices = @transform_0, window_bounds = array<i64: 8, 32>}, {transform_indices = @transform_1, window_bounds = array<i64: 32, 128>}, {transform_indices = @transform_2, window_bounds = array<i64: 1, 128>}, {transform_indices = @transform_3, window_bounds = array<i64: 128, 8>}, {pipeline_mode = #tpu.pipeline_mode<synchronous>, transform_indices = @transform_4, window_bounds = array<i64: 1, 8>}, {transform_indices = @transform_5, window_bounds = array<i64: 8, 8>}]} {
    %c0_i32 = arith.constant 0 : i32
    %0 = arith.cmpi eq, %arg1, %c0_i32 : i32
    %1 = arith.extui %0 : i1 to i32
    %c0_i32_0 = arith.constant 0 : i32
    %2 = arith.cmpi ne, %1, %c0_i32_0 : i32
    scf.if %2 {
      %cst_16 = arith.constant 0.000000e+00 : f32
      %20 = vector.broadcast %cst_16 : f32 to vector<8x8xf32>
      %c0_17 = arith.constant 0 : index
      %c0_18 = arith.constant 0 : index
      %21 = vector.load %arg8[%c0_17, %c0_18] : memref<8x8xf32, #tpu.memory_space<vmem>>, vector<8x8xf32>
      tpu.vector_store %arg8[%c0_17, %c0_18], %20 {strides = array<i32>} : memref<8x8xf32, #tpu.memory_space<vmem>>, vector<8x8xf32>,
    } else {
    }
    %c0 = arith.constant 0 : index
    %c0_1 = arith.constant 0 : index
    %3 = vector.load %arg2[%c0, %c0_1] : memref<8x32xbf16, #tpu.memory_space<vmem>>, vector<8x32xbf16>
    %c0_2 = arith.constant 0 : index
    %c0_3 = arith.constant 0 : index
    %4 = vector.load %arg3[%c0_2, %c0_3] : memref<32x128xbf16, #tpu.memory_space<vmem>>, vector<32x128xbf16>
    %cst = arith.constant dense<0.000000e+00> : vector<8x128xf32>
    %5 = tpu.matmul %3, %4, %cst {dimension_numbers = #tpu.dot_dimension_numbers<[1], [0], [0], [1], [0, 0, 1, 1], [], []>} : vector<8x32xbf16>, vector<32x128xbf16>, vector<8x128xf32> -> vector<8x128xf32>
    %c0_4 = arith.constant 0 : index
    %c0_5 = arith.constant 0 : index
    %6 = vector.load %arg4[%c0_4, %c0_5] : memref<1x128xf32, #tpu.memory_space<vmem>>, vector<1x128xf32>
    %7 = vector.broadcast %6 : vector<1x128xf32> to vector<8x128xf32>
    %8 = arith.addf %5, %7 : vector<8x128xf32>
    %cst_6 = arith.constant 0.000000e+00 : f32
    %9 = vector.broadcast %cst_6 : f32 to vector<8x128xf32>
    %10 = arith.maximumf %8, %9 : vector<8x128xf32>
    %c0_7 = arith.constant 0 : index
    %c0_8 = arith.constant 0 : index
    %11 = vector.load %arg8[%c0_7, %c0_8] : memref<8x8xf32, #tpu.memory_space<vmem>>, vector<8x8xf32>
    %12 = arith.truncf %10 : vector<8x128xf32> to vector<8x128xbf16>
    %c0_9 = arith.constant 0 : index
    %c0_10 = arith.constant 0 : index
    %13 = vector.load %arg5[%c0_9, %c0_10] : memref<128x8xbf16, #tpu.memory_space<vmem>>, vector<128x8xbf16>
    %cst_11 = arith.constant dense<0.000000e+00> : vector<8x8xf32>
    %14 = tpu.matmul %12, %13, %cst_11 {dimension_numbers = #tpu.dot_dimension_numbers<[1], [0], [0], [1], [0, 0, 1, 1], [], []>} : vector<8x128xbf16>, vector<128x8xbf16>, vector<8x8xf32> -> vector<8x8xf32>
    %15 = arith.addf %11, %14 : vector<8x8xf32>
    %c0_12 = arith.constant 0 : index
    %c0_13 = arith.constant 0 : index
    %16 = vector.load %arg8[%c0_12, %c0_13] : memref<8x8xf32, #tpu.memory_space<vmem>>, vector<8x8xf32>
    tpu.vector_store %arg8[%c0_12, %c0_13], %15 {strides = array<i32>} : memref<8x8xf32, #tpu.memory_space<vmem>>, vector<8x8xf32>,
    %c0_i32_14 = arith.constant 0 : i32
    %17 = arith.cmpi eq, %arg1, %c0_i32_14 : i32
    %18 = arith.extui %17 : i1 to i32
    %c0_i32_15 = arith.constant 0 : i32
    %19 = arith.cmpi ne, %18, %c0_i32_15 : i32
    scf.if %19 {
      %c0_16 = arith.constant 0 : index
      %c0_17 = arith.constant 0 : index
      %20 = vector.load %arg8[%c0_16, %c0_17] : memref<8x8xf32, #tpu.memory_space<vmem>>, vector<8x8xf32>
      %c0_18 = arith.constant 0 : index
      %c0_19 = arith.constant 0 : index
      %21 = vector.load %arg6[%c0_18, %c0_19] : memref<1x8xf32, #tpu.memory_space<vmem>>, vector<1x8xf32>
      %22 = vector.broadcast %21 : vector<1x8xf32> to vector<8x8xf32>
      %23 = arith.addf %20, %22 : vector<8x8xf32>
      %c0_20 = arith.constant 0 : index
      %c0_21 = arith.constant 0 : index
      %24 = vector.load %arg7[%c0_20, %c0_21] : memref<8x8xf32, #tpu.memory_space<vmem>>, vector<8x8xf32>
      tpu.vector_store %arg7[%c0_20, %c0_21], %23 {strides = array<i32>} : memref<8x8xf32, #tpu.memory_space<vmem>>, vector<8x8xf32>,
    } else {
    }
    return
  }
  func.func @transform_0(%arg0: i32, %arg1: i32) -> (i32, i32) {
    %c0_i32 = arith.constant 0 : i32
    %c0_i32_0 = arith.constant 0 : i32
    return %arg0, %c0_i32 : i32, i32
  }
  func.func @transform_1(%arg0: i32, %arg1: i32) -> (i32, i32) {
    %c0_i32 = arith.constant 0 : i32
    %c0_i32_0 = arith.constant 0 : i32
    return %c0_i32, %arg1 : i32, i32
  }
  func.func @transform_2(%arg0: i32, %arg1: i32) -> (i32, i32) {
    %c0_i32 = arith.constant 0 : i32
    %c0_i32_0 = arith.constant 0 : i32
    return %c0_i32, %arg1 : i32, i32
  }
  func.func @transform_3(%arg0: i32, %arg1: i32) -> (i32, i32) {
    %c0_i32 = arith.constant 0 : i32
    %c0_i32_0 = arith.constant 0 : i32
    return %arg1, %c0_i32 : i32, i32
  }
  func.func @transform_4(%arg0: i32, %arg1: i32) -> (i32, i32) {
    %c0_i32 = arith.constant 0 : i32
    %c0_i32_0 = arith.constant 0 : i32
    %c0_i32_1 = arith.constant 0 : i32
    return %c0_i32, %c0_i32_0 : i32, i32
  }
  func.func @transform_5(%arg0: i32, %arg1: i32) -> (i32, i32) {
    %c0_i32 = arith.constant 0 : i32
    %c0_i32_0 = arith.constant 0 : i32
    return %arg0, %c0_i32 : i32, i32
  }
}

</mosaic_0001>

<bundles_post_ra>
// kernel: tpu_custom_call.1
= control target key start
LH: loop header
LB: loop body
LE: loop exit
PB: predicated region body
PF: predicated region fallthrough
CT: control target
= control target key end

     0   :  { %v323_v1 = vmov 0.0   ;;  %vm324_vm0 = vmmov 0   ;;  %vm52_vm1 = vcmask 261120   ;;  %s410_s0 = inlined_call_operand.vmem [shape: bf16[8,32], index: 0, kind: input, shape index: {}]   ;;  %s411_s1 = inlined_call_operand.vmem [shape: bf16[32,128], index: 1, kind: input, shape index: {}]   ;;  %s412_s2 = inlined_call_operand.vmem [shape: f32[1,128], index: 2, kind: input, shape index: {}]   ;;  %s413_s3 = inlined_call_operand.vmem [shape: bf16[128,8], index: 3, kind: input, shape index: {}]   ;;  %s414_s4 = inlined_call_operand.vmem [shape: f32[1,8], index: 4, kind: input, shape index: {}]   ;;  %s415_s5 = inlined_call_operand.hbm [shape: f32[8,8], index: 5, kind: output, shape index: {}]  }
   0x1   :  { %v289_v0 = vld [vmem:[%s411_s1] sm:$0xff]   ;;  %258 = vmatprep.subr.bf16.mxu0 %v323_v1  ;;  %266 = vmatprep.subr.bf16.mxu1 %v323_v1  ;;  %v290_v2 = vld [vmem:[%s411_s1 + $0x8] sm:$0xff]   ;;  %v293_v6 = vld [vmem:[%s413_s3 + $0x10] sm:$0xff]  }
   0x2   :  { %259 = vmatpush3.bf16.msra.mxu0 %v289_v0  ;;  %262 = vmatprep.mubr.msk.bf16.mxu0 %vm324_vm0, %v323_v1  ;;  %v291_v3 = vld [vmem:[%s413_s3] sm:$0xff]   ;;  %v292_v4 = vld [vmem:[%s413_s3 + $0x8] sm:$0xff]  }
   0x3   :  { %260 = vmatprep.subr.bf16.mxu0 %v323_v1  ;;  %282 = vmatprep.mubr.msk.bf16.mxu1 %vm324_vm0, %v323_v1  ;;  %v28_v5 = vld [vmem:[%s410_s0] sm:$0xf] }
   0x4   :  { %267 = vmatpush3.bf16.msra.mxu1 %v291_v3 }
   0x5   :  { %268 = vmatprep.subr.bf16.mxu1 %v323_v1 }
   0x6   :  { %261 = vmatpush3.bf16.msra.mxu0 %v290_v2 }
   0x8   :  { %269 = vmatpush3.bf16.msra.mxu1 %v292_v4 }
   0x9   :  { %263 = vmatmul.mubr.msk.bf16.vlgmr.msra.gmra.mrb[0].mxu0 %vm52_vm1, %v28_v5  ;;  %270 = vmatprep.subr.bf16.mxu1 %v323_v1 }
   0xa   :  { %10 = vsyncpa [#allocation4], 0  ;;  %v294_v7 = vld [vmem:[%s413_s3 + $0x18] sm:$0xff]   ;;  %v295_v8 = vld [vmem:[%s413_s3 + $0x20] sm:$0xff]   ;;  %vm26_vm2 = vcmask 64512  }
   0xb   :  { %v296_v9 = vld [vmem:[%s413_s3 + $0x28] sm:$0xff]   ;;  %v297_v10 = vld [vmem:[%s413_s3 + $0x30] sm:$0xff]   ;;  %v298_v11 = vld [vmem:[%s413_s3 + $0x38] sm:$0xff]   ;;  %27 = vst.msk [vmem:[#allocation2] sm:$0xff] %vm26_vm2, %v323_v1 }
   0xc   :  { %271 = vmatpush3.bf16.msra.mxu1 %v293_v6  ;;  %v233_v12 = vld [vmem:[%s412_s2] ss:$0 sm:$0xff]  ;;  %s325_s2 = smov [#allocation3]  }
   0xd   :  { %272 = vmatprep.subr.bf16.mxu1 %v323_v1  ;;  %v245_v26 = vld [vmem:[%s414_s4] ss:$0 sm:$0xff]  ;;  %s225_s16 = sshll.u32 %s325_s2, 4  ;;  %s226_s16 = int_to_ptr.vmem [resolvable:$true] %s225_s16 }
   0xe   :  { %s299_s17 = scalar_lea.vmem %s226_s16, 128  ;;  %p304_p1 = scmp.lt.s32.totalorder %s226_s16, %s226_s16 }
   0xf   :  { %p300_p0 = scmp.ne.s32.totalorder %s226_s16, %s299_s17  ;;  %p305_p2 = scmp.lt.s32.totalorder %s299_s17, %s299_s17 }
  0x10   :  { %273 = vmatpush3.bf16.msra.mxu1 %v294_v7 }
  0x11   :  { %274 = vmatprep.subr.bf16.mxu1 %v323_v1  ;;  %p306_p3 = por %p305_p2, %p304_p1 }
  0x12   :  { %v97_v20 = vld [vmem:[#allocation2] sm:$0xff] }
  0x13   :  { %p307_p4 = pnand %p306_p3, %p300_p0 }
  0x14   :  { %275 = vmatpush3.bf16.msra.mxu1 %v295_v8 }
  0x15   :  { %276 = vmatprep.subr.bf16.mxu1 %v323_v1 }
  0x18   :  { %277 = vmatpush3.bf16.msra.mxu1 %v296_v9 }
  0x19   :  { %278 = vmatprep.subr.bf16.mxu1 %v323_v1 }
  0x1c   :  { %279 = vmatpush3.bf16.msra.mxu1 %v297_v10 }
  0x1d   :  { %280 = vmatprep.subr.bf16.mxu1 %v323_v1 }
  0x20   :  { %281 = vmatpush3.bf16.msra.mxu1 %v298_v11 }
  0xdc   :  { %v90_v13 = vpop.f32.mrb[0].mxu0 }
  0xdd   :  { %v91_v14 = vadd.f32 %v233_v12, %v90_v13  ;;  %v264_v15 = vpop.f32.mrb[1].mxu0 }
  0xde   :  { %v93_v16 = vpop.f32.mrb[2].mxu0 }
  0xdf   :  { %v96_v17 = vmax.f32 %v91_v14, 0.0  ;;  %v265_v18 = vpop.f32.mrb[3].mxu0 }
  0xe1   :  { %v98_v19 = vpack.c.bf16 %v96_v17, %v96_v17 }
  0xe3   :  { %283 = vmatmul.mubr.bf16.vlgmr.msra.gmra.mrb[0].mxu1 %v98_v19 }
 0x1b6   :  { %v197_v21 = vpop.f32.mrb[0].mxu1 }
 0x1b7   :  { %v203_v22 = vadd.f32 %v197_v21, %v97_v20  ;;  %v284_v23 = vpop.f32.mrb[1].mxu1 }
 0x1b8   :  { %v200_v24 = vpop.f32.mrb[2].mxu1 }
 0x1b9   :  { %205 = vst.msk [vmem:[#allocation2] sm:$0xff] %vm26_vm2, %v203_v22  ;;  %v285_v25 = vpop.f32.mrb[3].mxu1 }
 0x1c0   :  { %v209_v27 = vld [vmem:[#allocation2] sm:$0xff] }
 0x1c1   :  { %v217_v28 = vadd.f32 %v245_v26, %v209_v27 }
 0x1c3   :  { %218 = vst.msk [vmem:[#allocation3] sm:$0xff] %vm26_vm2, %v217_v28 }
 0x1c4   :  { %310 = shalt.err (!%p307_p4)
}
 0x1c5   :  { %s311_s20 = scalar_lea.hbm %s415_s5, 128 }
 0x1c6   :  { %p312_p5 = scmp.ne.s32.totalorder %s415_s5, %s311_s20  ;;  %p315_p6 = scmp.lt.u32.totalorder %s311_s20, %s415_s5 }
 0x1c8   :  { %p317_p7 = pnand %p315_p6, %p312_p5 }
 0x1ca   :  { %320 = shalt.err (!%p317_p7)
}
 0x1cb   :  { %228 = dma.vmem_to_hbm [thread:$0]  %s226_s16, 128, %s415_s5, [#allocation4]  }
 0x1cc   :  { %321 = dma.done.wait [#allocation4], 128  }
 0x1cd   :  { %322 = vsyncadd [#allocation4], 4294967168 }
 0x1ce   :  { %232 = vsyncpa [#allocation4], 1 }

</bundles_post_ra>
